<compile_context>
chip_gen: v6e
topology: v6e:2x2x1
jax: 0.10.0
libtpu: 0.0.40
codegen_flags: <defaults>
</compile_context>

<pallas_src>
import functools

import jax
import jax.numpy as jnp
from jax.experimental import pallas as pl
from jax.experimental.pallas import tpu as pltpu

_LANE = 128            # lane width (last dim)
_SUBLANE = 8           # sublane width (second-to-last dim)
_MAX_BATCH_TILE = 2048  # rows per grid step; big tiles amortize the ~0.35us/step overhead


def _cdiv(a, b):
    return -(-a // b)


def _round_up(n, m):
    return _cdiv(n, m) * m


def _apply_hidden_act(y, act):
    if act == "relu":
        return jnp.maximum(y, 0.0)
    if act == "sigmoid":
        # NOTE: padded hidden lanes become sigmoid(0)=0.5 here; they are cancelled only
        # because the NEXT layer's padded weight ROWS are zero.  Keep that invariant if
        # the padding scheme ever changes.
        return jax.nn.sigmoid(y)
    if act == "tanh":
        return jnp.tanh(y)
    return y  # PyTorch module appends no activation for unknown names


def _fused_mlp_kernel(x_ref, *refs, n_layers, hidden_act):
    """One batch tile through the whole MLP.

    refs = (w0, b0, ..., w_{L-1}, b_{L-1}, o_ref). Hidden layers are MXU matmuls with f32
    accumulation; the final Linear(., 1) is a VPU multiply + XLU lane-reduce against a
    (1, D) weight row so the store is only 1 column wide. Intermediates never leave VMEM.
    """
    o_ref = refs[-1]
    h = x_ref[...]
    for i in range(n_layers - 1):
        w = refs[2 * i][...]
        b = refs[2 * i + 1][...]                      # (1, D_out) row, broadcast over tile
        y = jnp.dot(h, w, preferred_element_type=jnp.float32) + b.astype(jnp.float32)
        h = _apply_hidden_act(y, hidden_act).astype(w.dtype)
    w_row = refs[2 * (n_layers - 1)][...].astype(jnp.float32)      # (1, D_prev)
    b_out = refs[2 * (n_layers - 1) + 1][...].astype(jnp.float32)  # (1, 1)
    y = jnp.sum(h.astype(jnp.float32) * w_row, axis=-1, keepdims=True) + b_out
    o_ref[...] = jax.nn.sigmoid(y).astype(o_ref.dtype)             # final Sigmoid (exact)


def fused_mlp_forward(x, padded_params, *, hidden_act):
    """x: (B, D_in) unpadded. padded_params: [(w, b)] in kernel layout (see SimpleNNPallas)."""
    B, d_in = x.shape
    compute_dtype = padded_params[0][0].dtype
    n_layers = len(padded_params)

    # Batch tiling: big tiles, but (a) at least 2 grid steps whenever B permits (v7x has two
    # TensorCores sharing the "parallel" axis) and (b) minimal batch padding (<= 7 junk rows)
    # instead of rounding B up to a multiple of a fixed tile.
    n_tiles = max(_cdiv(B, _MAX_BATCH_TILE), min(2, _cdiv(B, _SUBLANE)))
    b_tile = _round_up(_cdiv(B, n_tiles), _SUBLANE)
    b_pad = _round_up(B, b_tile)

    x_c = x.astype(compute_dtype)
    if b_pad != B:
        x_c = jnp.zeros((b_pad, d_in), compute_dtype).at[:B].set(x_c)

    # x keeps its native feature width: block last dim == full array dim is legal, so only
    # the real bytes of x are DMA'd.  Weights/biases use constant index_maps (VMEM-resident).
    in_specs = [pl.BlockSpec((b_tile, d_in), lambda i: (i, 0))]
    flat_params = []
    for w, b in padded_params:
        in_specs.append(pl.BlockSpec(w.shape, lambda i: (0, 0)))
        in_specs.append(pl.BlockSpec(b.shape, lambda i: (0, 0)))
        flat_params.extend((w, b))

    kernel = functools.partial(
        _fused_mlp_kernel, n_layers=n_layers, hidden_act=hidden_act)

    out = pl.pallas_call(
        kernel,
        out_shape=jax.ShapeDtypeStruct((b_pad, 1), jnp.float32),   # 1-wide writeback
        grid=(b_pad // b_tile,),
        in_specs=in_specs,
        out_specs=pl.BlockSpec((b_tile, 1), lambda i: (i, 0)),
        compiler_params=pltpu.CompilerParams(
            # Batch tiles are independent -> shard across TensorCores (v7x megacore).
            dimension_semantics=("parallel",),
        ),
    )(x_c, *flat_params)

    return out[:B]   # drop batch-padding rows (garbage 0.5s); fused into the jit


class SimpleNNPallas:
    """Mirror of the PyTorch SimpleNN forward pass, executed as one fused Pallas kernel."""

    def __init__(self, input_dim, hidden_layers, activation_function, key,
                 compute_dtype=jnp.float32):
        act_map = {"ReLU": "relu", "Sigmoid": "sigmoid", "Tanh": "tanh"}
        self.hidden_act = act_map.get(activation_function, "none")
        self.params = []          # unpadded f32 (reference / checkpoint layout)
        self.padded_params = []   # kernel layout: hidden dims lane-padded, last layer as a row

        dims = list(hidden_layers) + [1]
        prev_dim = input_dim
        prev_pad = input_dim      # x enters the kernel at its native feature width
        for li, neurons in enumerate(dims):
            key, wk, bk = jax.random.split(key, 3)
            # PyTorch nn.Linear default init: U(-1/sqrt(fan_in), 1/sqrt(fan_in))
            bound = 1.0 / float(prev_dim) ** 0.5
            w = jax.random.uniform(wk, (prev_dim, neurons), jnp.float32,
                                   minval=-bound, maxval=bound)
            b = jax.random.uniform(bk, (neurons,), jnp.float32,
                                   minval=-bound, maxval=bound)
            self.params.append((w, b))

            if li == len(dims) - 1:
                # Final Linear(., 1): stored as a zero-padded (1, prev_pad) row + (1, 1) bias
                # so the kernel can do a VPU multiply + lane-reduce and a 1-wide store.
                w_pad = jnp.zeros((1, prev_pad), compute_dtype).at[0, :prev_dim].set(
                    w[:, 0].astype(compute_dtype))
                b_pad = b.reshape(1, 1).astype(compute_dtype)
            else:
                do_pad = _round_up(neurons, _LANE)
                w_pad = jnp.zeros((prev_pad, do_pad), compute_dtype).at[
                    :prev_dim, :neurons].set(w.astype(compute_dtype))
                b_pad = jnp.zeros((1, do_pad), compute_dtype).at[0, :neurons].set(
                    b.astype(compute_dtype))
                prev_pad = do_pad
            self.padded_params.append((w_pad, b_pad))
            prev_dim = neurons

        # jit fuses the host-side batch pad, the pallas_call and the [:B] slice into one
        # executable (separate dispatches cost as much as the kernel at small/medium B).
        self._forward = jax.jit(
            functools.partial(fused_mlp_forward, hidden_act=self.hidden_act))

    def __call__(self, x):
        return self._forward(x, self.padded_params)


if __name__ == "__main__":
    key = jax.random.PRNGKey(0)
    key, xkey, x2key, pkey = jax.random.split(key, 4)

    batch = 8
    input_dim = 16
    hidden_layers = [32, 32]

    model = SimpleNNPallas(input_dim, hidden_layers, "ReLU", pkey)

    def reference(x):
        h = x
        for i, (w, b) in enumerate(model.params):
            h = h @ w + b
            h = jnp.maximum(h, 0.0) if i < len(model.params) - 1 else jax.nn.sigmoid(h)
        return h

    # Small batch: single grid step.
    x = jax.random.normal(xkey, (batch, input_dim), dtype=jnp.float32)
    out = jax.block_until_ready(model(x))
    assert out.shape == (batch, 1), out.shape
    assert bool(jnp.all((out >= 0.0) & (out <= 1.0))), "sigmoid output out of range"
    assert jnp.allclose(out, reference(x), atol=1e-4, rtol=1e-4), \
        "mismatch vs reference (small batch)"

    # Larger batch exercising the batch-tiled grid (2 tiles of 304 rows, only 8 padding rows).
    x_big = jax.random.normal(x2key, (600, input_dim), dtype=jnp.float32)
    out_big = jax.block_until_ready(model(x_big))
    assert out_big.shape == (600, 1), out_big.shape
    assert jnp.allclose(out_big, reference(x_big), atol=1e-4, rtol=1e-4), \
        "mismatch vs reference (batched grid)"

    print("KERNEL_OK")
</pallas_src>

<mosaic_0001>
module attributes {stable_mosaic.version = 11 : i64} {
  func.func @_fused_mlp_kernel(%arg0: i32, %arg1: memref<8x16xf32, #tpu.memory_space<vmem>>, %arg2: memref<16x128xf32, #tpu.memory_space<vmem>>, %arg3: memref<1x128xf32, #tpu.memory_space<vmem>>, %arg4: memref<128x128xf32, #tpu.memory_space<vmem>>, %arg5: memref<1x128xf32, #tpu.memory_space<vmem>>, %arg6: memref<1x128xf32, #tpu.memory_space<vmem>>, %arg7: memref<1x1xf32, #tpu.memory_space<vmem>>, %arg8: memref<8x1xf32, #tpu.memory_space<vmem>>) attributes {dimension_semantics = [#tpu.dimension_semantics<parallel>], iteration_bounds = array<i64: 1>, scalar_prefetch = 0 : i64, scratch_operands = 0 : i64, tpu.core_type = #tpu.core_type<tc>, window_params = [{transform_indices = @transform_0, window_bounds = array<i64: 8, 16>}, {pipeline_mode = #tpu.pipeline_mode<synchronous>, transform_indices = @transform_1, window_bounds = array<i64: 16, 128>}, {pipeline_mode = #tpu.pipeline_mode<synchronous>, transform_indices = @transform_2, window_bounds = array<i64: 1, 128>}, {pipeline_mode = #tpu.pipeline_mode<synchronous>, transform_indices = @transform_3, window_bounds = array<i64: 128, 128>}, {pipeline_mode = #tpu.pipeline_mode<synchronous>, transform_indices = @transform_4, window_bounds = array<i64: 1, 128>}, {pipeline_mode = #tpu.pipeline_mode<synchronous>, transform_indices = @transform_5, window_bounds = array<i64: 1, 128>}, {pipeline_mode = #tpu.pipeline_mode<synchronous>, transform_indices = @transform_6, window_bounds = array<i64: 1, 1>}, {transform_indices = @transform_7, window_bounds = array<i64: 8, 1>}]} {
    %c0 = arith.constant 0 : index
    %c0_0 = arith.constant 0 : index
    %0 = vector.load %arg1[%c0, %c0_0] : memref<8x16xf32, #tpu.memory_space<vmem>>, vector<8x16xf32>
    %c0_1 = arith.constant 0 : index
    %c0_2 = arith.constant 0 : index
    %1 = vector.load %arg2[%c0_1, %c0_2] : memref<16x128xf32, #tpu.memory_space<vmem>>, vector<16x128xf32>
    %c0_3 = arith.constant 0 : index
    %c0_4 = arith.constant 0 : index
    %2 = vector.load %arg3[%c0_3, %c0_4] : memref<1x128xf32, #tpu.memory_space<vmem>>, vector<1x128xf32>
    %cst = arith.constant dense<0.000000e+00> : vector<8x128xf32>
    %3 = tpu.matmul %0, %1, %cst {dimension_numbers = #tpu.dot_dimension_numbers<[1], [0], [0], [1], [0, 0, 1, 1], [], []>} : vector<8x16xf32>, vector<16x128xf32>, vector<8x128xf32> -> vector<8x128xf32>
    %4 = vector.broadcast %2 : vector<1x128xf32> to vector<8x128xf32>
    %5 = arith.addf %3, %4 : vector<8x128xf32>
    %cst_5 = arith.constant 0.000000e+00 : f32
    %6 = vector.broadcast %cst_5 : f32 to vector<8x128xf32>
    %7 = arith.maximumf %5, %6 : vector<8x128xf32>
    %c0_6 = arith.constant 0 : index
    %c0_7 = arith.constant 0 : index
    %8 = vector.load %arg4[%c0_6, %c0_7] : memref<128x128xf32, #tpu.memory_space<vmem>>, vector<128x128xf32>
    %c0_8 = arith.constant 0 : index
    %c0_9 = arith.constant 0 : index
    %9 = vector.load %arg5[%c0_8, %c0_9] : memref<1x128xf32, #tpu.memory_space<vmem>>, vector<1x128xf32>
    %cst_10 = arith.constant dense<0.000000e+00> : vector<8x128xf32>
    %10 = tpu.matmul %7, %8, %cst_10 {dimension_numbers = #tpu.dot_dimension_numbers<[1], [0], [0], [1], [0, 0, 1, 1], [], []>} : vector<8x128xf32>, vector<128x128xf32>, vector<8x128xf32> -> vector<8x128xf32>
    %11 = vector.broadcast %9 : vector<1x128xf32> to vector<8x128xf32>
    %12 = arith.addf %10, %11 : vector<8x128xf32>
    %cst_11 = arith.constant 0.000000e+00 : f32
    %13 = vector.broadcast %cst_11 : f32 to vector<8x128xf32>
    %14 = arith.maximumf %12, %13 : vector<8x128xf32>
    %c0_12 = arith.constant 0 : index
    %c0_13 = arith.constant 0 : index
    %15 = vector.load %arg6[%c0_12, %c0_13] : memref<1x128xf32, #tpu.memory_space<vmem>>, vector<1x128xf32>
    %c0_14 = arith.constant 0 : index
    %c0_15 = arith.constant 0 : index
    %16 = vector.load %arg7[%c0_14, %c0_15] : memref<1x1xf32, #tpu.memory_space<vmem>>, vector<1x1xf32>
    %17 = vector.broadcast %15 : vector<1x128xf32> to vector<8x128xf32>
    %18 = arith.mulf %14, %17 : vector<8x128xf32>
    %cst_16 = arith.constant dense<0.000000e+00> : vector<8xf32>
    %19 = vector.multi_reduction <add>, %18, %cst_16 [1] : vector<8x128xf32> to vector<8xf32>
    %20 = vector.shape_cast %19 : vector<8xf32> to vector<8x1xf32>
    %21 = vector.broadcast %16 : vector<1x1xf32> to vector<8x1xf32>
    %22 = arith.addf %20, %21 : vector<8x1xf32>
    %23 = arith.negf %22 : vector<8x1xf32>
    %24 = math.exp %23 : vector<8x1xf32>
    %cst_17 = arith.constant 1.000000e+00 : f32
    %25 = vector.broadcast %cst_17 : f32 to vector<8x1xf32>
    %26 = arith.addf %25, %24 : vector<8x1xf32>
    %27 = arith.divf %25, %26 : vector<8x1xf32>
    %c0_18 = arith.constant 0 : index
    %c0_19 = arith.constant 0 : index
    %28 = vector.load %arg8[%c0_18, %c0_19] : memref<8x1xf32, #tpu.memory_space<vmem>>, vector<8x1xf32>
    tpu.vector_store %arg8[%c0_18, %c0_19], %27 {strides = array<i32>} : memref<8x1xf32, #tpu.memory_space<vmem>>, vector<8x1xf32>,
    return
  }
  func.func @transform_0(%arg0: i32) -> (i32, i32) {
    %c0_i32 = arith.constant 0 : i32
    %c0_i32_0 = arith.constant 0 : i32
    return %arg0, %c0_i32 : i32, i32
  }
  func.func @transform_1(%arg0: i32) -> (i32, i32) {
    %c0_i32 = arith.constant 0 : i32
    %c0_i32_0 = arith.constant 0 : i32
    %c0_i32_1 = arith.constant 0 : i32
    return %c0_i32, %c0_i32_0 : i32, i32
  }
  func.func @transform_2(%arg0: i32) -> (i32, i32) {
    %c0_i32 = arith.constant 0 : i32
    %c0_i32_0 = arith.constant 0 : i32
    %c0_i32_1 = arith.constant 0 : i32
    return %c0_i32, %c0_i32_0 : i32, i32
  }
  func.func @transform_3(%arg0: i32) -> (i32, i32) {
    %c0_i32 = arith.constant 0 : i32
    %c0_i32_0 = arith.constant 0 : i32
    %c0_i32_1 = arith.constant 0 : i32
    return %c0_i32, %c0_i32_0 : i32, i32
  }
  func.func @transform_4(%arg0: i32) -> (i32, i32) {
    %c0_i32 = arith.constant 0 : i32
    %c0_i32_0 = arith.constant 0 : i32
    %c0_i32_1 = arith.constant 0 : i32
    return %c0_i32, %c0_i32_0 : i32, i32
  }
  func.func @transform_5(%arg0: i32) -> (i32, i32) {
    %c0_i32 = arith.constant 0 : i32
    %c0_i32_0 = arith.constant 0 : i32
    %c0_i32_1 = arith.constant 0 : i32
    return %c0_i32, %c0_i32_0 : i32, i32
  }
  func.func @transform_6(%arg0: i32) -> (i32, i32) {
    %c0_i32 = arith.constant 0 : i32
    %c0_i32_0 = arith.constant 0 : i32
    %c0_i32_1 = arith.constant 0 : i32
    return %c0_i32, %c0_i32_0 : i32, i32
  }
  func.func @transform_7(%arg0: i32) -> (i32, i32) {
    %c0_i32 = arith.constant 0 : i32
    %c0_i32_0 = arith.constant 0 : i32
    return %arg0, %c0_i32 : i32, i32
  }
}

</mosaic_0001>

<bundles_post_ra>
// kernel: fused_mlp_forward.1
= control target key start
LH: loop header
LB: loop body
LE: loop exit
PB: predicated region body
PF: predicated region fallthrough
CT: control target
= control target key end

     0   :  { %s492_s0 = inlined_call_operand.hbm [shape: f32[8,16], index: 0, kind: input, shape index: {}]   ;;  %s493_s1 = inlined_call_operand.hbm [shape: f32[16,128], index: 1, kind: input, shape index: {}]   ;;  %s494_s2 = inlined_call_operand.vmem [shape: f32[1,128], index: 2, kind: input, shape index: {}]   ;;  %s495_s3 = inlined_call_operand.hbm [shape: f32[128,128], index: 3, kind: input, shape index: {}]   ;;  %s496_s4 = inlined_call_operand.vmem [shape: f32[1,128], index: 4, kind: input, shape index: {}]   ;;  %s497_s5 = inlined_call_operand.vmem [shape: f32[1,128], index: 5, kind: input, shape index: {}]   ;;  %s498_s6 = inlined_call_operand.<no memory space> [shape: f32[1,1], index: 6, kind: input, shape index: {}]   ;;  %s499_s7 = inlined_call_operand.vmem [shape: f32[8,1], index: 7, kind: output, shape index: {}]  }
   0x1   :  { %v12_v0 = vstv %s498_s6 }
   0x2   :  { %13 = vst [vmem:[#allocation2] sm:$0x1] %v12_v0 }
   0x3   :  { %14 = vsyncpa [#allocation4], 0 }
   0x4   :  { %15 = vsyncpa [#allocation6], 0  ;;  %s421_s26 = smov [#allocation5]  }
   0x5   :  { %s31_s27 = sshll.u32 %s421_s26, 4  ;;  %s32_s27 = int_to_ptr.vmem [resolvable:$true] %s31_s27 }
   0x6   :  { %s365_s28 = scalar_lea.vmem %s32_s27, 256  ;;  %p370_p1 = scmp.lt.s32.totalorder %s32_s27, %s32_s27 }
   0x7   :  { %p366_p0 = scmp.ne.s32.totalorder %s32_s27, %s365_s28  ;;  %p371_p2 = scmp.lt.s32.totalorder %s365_s28, %s365_s28 }
   0x9   :  { %p372_p3 = por %p371_p2, %p370_p1 }
   0xb   :  { %p373_p4 = pnand %p372_p3, %p366_p0 }
   0xd   :  { %376 = shalt.err (!%p373_p4)
}
   0xe   :  { %s422_s29 = smov 128   ;;  %s423_s30 = smov 8  }
   0xf   :  { %37 = dma.hbm_to_vmem [thread:$0]  %s493_s1, 256, %s32_s27, [#allocation6], %s422_s29, %s422_s29, %s423_s30  }
  0x10   :  { %s424_s6 = smov [#allocation3]   ;;  %s425_s11 = smov [#allocation7]  }
  0x11   :  { %s22_s10 = sshll.u32 %s424_s6, 4  ;;  %s45_s12 = sshll.u32 %s425_s11, 4  ;;  %s23_s10 = int_to_ptr.vmem [resolvable:$true] %s22_s10  ;;  %s46_s12 = int_to_ptr.vmem [resolvable:$true] %s45_s12 }
  0x12   :  { %s385_s13 = scalar_lea.vmem %s23_s10, 128  ;;  %p390_p6 = scmp.lt.s32.totalorder %s23_s10, %s23_s10 }
  0x13   :  { %p386_p5 = scmp.ne.s32.totalorder %s23_s10, %s385_s13  ;;  %p391_p7 = scmp.lt.s32.totalorder %s385_s13, %s385_s13 }
  0x15   :  { %p392_p8 = por %p391_p7, %p390_p6 }
  0x17   :  { %p393_p9 = pnand %p392_p8, %p386_p5 }
  0x19   :  { %396 = shalt.err (!%p393_p9)
}
  0x1a   :  { %25 = dma.hbm_to_vmem [thread:$0]  %s492_s0, 128, %s23_s10, [#allocation4]  }
  0x1b   :  { %s405_s16 = scalar_lea.vmem %s46_s12, 2048  ;;  %p410_p11 = scmp.lt.s32.totalorder %s46_s12, %s46_s12 }
  0x1c   :  { %p406_p10 = scmp.ne.s32.totalorder %s46_s12, %s405_s16  ;;  %p411_p12 = scmp.lt.s32.totalorder %s405_s16, %s405_s16 }
  0x1e   :  { %p412_p13 = por %p411_p12, %p410_p11 }
  0x20   :  { %p413_p0 = pnand %p412_p13, %p406_p10 }
  0x22   :  { %416 = shalt.err (!%p413_p0)
}
  0x23   :  { %51 = dma.hbm_to_vmem [thread:$0]  %s495_s3, 2048, %s46_s12, [#allocation6], %s422_s29, %s422_s29, %s423_s30  }
  0x24   :  { %417 = dma.done.wait [#allocation4], 128  }
  0x25   :  { %418 = vsyncadd [#allocation4], 4294967168 }
  0x26   :  { %419 = dma.done.wait [#allocation6], 2304  }
  0x27   :  { %420 = vsyncadd [#allocation6], 4294964992  ;;  %v426_v1 = vmov 0.0   ;;  %vm427_vm0 = vmmov 0   ;;  %v69_v2 = vld [vmem:[#allocation5 + $0x8] sm:$0xff]  ;;  %v68_v3 = vld [vmem:[#allocation5] sm:$0xff] }
  0x28   :  { %304 = vmatprep.subr.mxu0 %v426_v1  ;;  %308 = vmatprep.mubr.msk.f32.mxu0 %vm427_vm0, %v426_v1  ;;  %v67_v4 = vld [vmem:[#allocation3] sm:$0xff]  ;;  %vm77_vm1 = vcmask 130048   ;;  %v167_v5 = vld [vmem:[#allocation7 + $0x78] sm:$0xff]  ;;  %v166_v6 = vld [vmem:[#allocation7 + $0x70] sm:$0xff]  ;;  %vm270_vm2 = vcmask 7168  }
  0x29   :  { %311 = vmatprep.subr.mxu1 %v426_v1  ;;  %343 = vmatprep.mubr.msk.f32.mxu1 %vm427_vm0, %v426_v1  ;;  %v165_v7 = vld [vmem:[#allocation7 + $0x68] sm:$0xff]  ;;  %v164_v8 = vld [vmem:[#allocation7 + $0x60] sm:$0xff]  ;;  %v163_v9 = vld [vmem:[#allocation7 + $0x58] sm:$0xff] }
  0x2a   :  { %305 = vmatpush3.msra.mxu0 %v69_v2  ;;  %312 = vmatpush3.msra.mxu1 %v167_v5  ;;  %v162_v10 = vld [vmem:[#allocation7 + $0x50] sm:$0xff]  ;;  %v161_v11 = vld [vmem:[#allocation7 + $0x48] sm:$0xff]  ;;  %v160_v12 = vld [vmem:[#allocation7 + $0x40] sm:$0xff] }
  0x2b   :  { %306 = vmatprep.subr.mxu0 %v426_v1  ;;  %313 = vmatprep.subr.mxu1 %v426_v1  ;;  %v159_v13 = vld [vmem:[#allocation7 + $0x38] sm:$0xff]  ;;  %v158_v14 = vld [vmem:[#allocation7 + $0x30] sm:$0xff]  ;;  %v157_v15 = vld [vmem:[#allocation7 + $0x28] sm:$0xff] }
  0x2c   :  { %307 = vmatpush3.msra.mxu0 %v68_v3  ;;  %314 = vmatpush3.msra.mxu1 %v166_v6  ;;  %v156_v16 = vld [vmem:[#allocation7 + $0x20] sm:$0xff]  ;;  %v155_v17 = vld [vmem:[#allocation7 + $0x18] sm:$0xff]  ;;  %v154_v18 = vld [vmem:[#allocation7 + $0x10] sm:$0xff] }
  0x2d   :  { %309 = vmatmul.mubr.msk.f32.vlgmr.msra.gmra.mxu0 %vm77_vm1, %v67_v4  ;;  %315 = vmatprep.subr.mxu1 %v426_v1  ;;  %v153_v19 = vld [vmem:[#allocation7 + $0x8] sm:$0xff]  ;;  %v152_v20 = vld [vmem:[#allocation7] sm:$0xff] }
  0x2e   :  { %316 = vmatpush3.msra.mxu1 %v165_v7  ;;  %v278_v21 = vld [vmem:[%s494_s2] ss:$0 sm:$0xff] }
  0x2f   :  { %317 = vmatprep.subr.mxu1 %v426_v1  ;;  %v280_v26 = vld [vmem:[%s496_s4] ss:$0 sm:$0xff] }
  0x30   :  { %318 = vmatpush3.msra.mxu1 %v164_v8  ;;  %v281_v30 = vld [vmem:[%s497_s5] ss:$0 sm:$0xff] }
  0x31   :  { %319 = vmatprep.subr.mxu1 %v426_v1  ;;  %v282_v33 = vld [vmem:[#allocation2] ss:$0 sm:$0xff] }
  0x32   :  { %320 = vmatpush3.msra.mxu1 %v163_v9 }
  0x33   :  { %321 = vmatprep.subr.mxu1 %v426_v1 }
  0x34   :  { %322 = vmatpush3.msra.mxu1 %v162_v10 }
  0x35   :  { %323 = vmatprep.subr.mxu1 %v426_v1 }
  0x36   :  { %324 = vmatpush3.msra.mxu1 %v161_v11 }
  0x37   :  { %325 = vmatprep.subr.mxu1 %v426_v1 }
  0x38   :  { %326 = vmatpush3.msra.mxu1 %v160_v12 }
  0x39   :  { %327 = vmatprep.subr.mxu1 %v426_v1 }
  0x3a   :  { %328 = vmatpush3.msra.mxu1 %v159_v13 }
  0x3b   :  { %329 = vmatprep.subr.mxu1 %v426_v1 }
  0x3c   :  { %330 = vmatpush3.msra.mxu1 %v158_v14 }
  0x3d   :  { %331 = vmatprep.subr.mxu1 %v426_v1 }
  0x3e   :  { %332 = vmatpush3.msra.mxu1 %v157_v15 }
  0x3f   :  { %333 = vmatprep.subr.mxu1 %v426_v1 }
  0x40   :  { %334 = vmatpush3.msra.mxu1 %v156_v16 }
  0x41   :  { %335 = vmatprep.subr.mxu1 %v426_v1 }
  0x42   :  { %336 = vmatpush3.msra.mxu1 %v155_v17 }
  0x43   :  { %337 = vmatprep.subr.mxu1 %v426_v1 }
  0x44   :  { %338 = vmatpush3.msra.mxu1 %v154_v18 }
  0x45   :  { %339 = vmatprep.subr.mxu1 %v426_v1 }
  0x46   :  { %340 = vmatpush3.msra.mxu1 %v153_v19 }
  0x47   :  { %341 = vmatprep.subr.mxu1 %v426_v1 }
  0x48   :  { %342 = vmatpush3.msra.mxu1 %v152_v20 }
  0xed   :  { %v147_v22 = vpop.f32.mrf.mxu0 }
  0xee   :  { %v148_v23 = vadd.f32 %v278_v21, %v147_v22 }
  0xef   :  { %v310_v24 = vpop.f32.mrf.mxu0 }
  0xf0   :  { %v151_v25 = vmax.f32 %v148_v23, 0.0 }
  0xf2   :  { %344 = vmatmul.mubr.f32.vlgmr.msra.gmra.mxu1 %v151_v25 }
 0x1b2   :  { %v241_v27 = vpop.f32.mrf.mxu1 }
 0x1b3   :  { %v242_v28 = vadd.f32 %v280_v26, %v241_v27 }
 0x1b4   :  { %v345_v29 = vpop.f32.mrf.mxu1 }
 0x1b5   :  { %v245_v31 = vmax.f32 %v242_v28, 0.0 }
 0x1b7   :  { %v254_v32 = vmul.f32 %v281_v30, %v245_v31 }
 0x1b9   :  { %255 = vadd.xlane.f32.xlu0 %v254_v32 }
 0x242   :  { %v256_v34 = vpop.xlane.xlu0 %255 }
 0x243   :  { %v263_v35 = vadd.f32 %v282_v33, %v256_v34 }
 0x245   :  { %v283_v36 = vmul.f32 -1.442695, %v263_v35 }
 0x247   :  { %353 = vpow2.f32 %v283_v36 }
 0x254   :  { %v354_v37 = vpop.eup %353 }
 0x255   :  { %v267_v38 = vadd.f32 1.0, %v354_v37 }
 0x257   :  { %355 = vrcp.f32 %v267_v38 }
 0x264   :  { %v356_v39 = vpop.eup %355 }
 0x265   :  { %271 = vst.msk [vmem:[%s499_s7] sm:$0xff] %vm270_vm2, %v356_v39 }
 0x266   :  { %276 = vsyncpa [#allocation4], 1 }
 0x267   :  { %277 = vsyncpa [#allocation6], 1 }

</bundles_post_ra>
